<compile_context>
chip_gen: v7x
topology: tpu7x:2x2x1
jax: 0.10.0
libtpu: 0.0.40
codegen_flags: <defaults>
</compile_context>

<pallas_src>
import functools

import jax
import jax.numpy as jnp
from jax.experimental import pallas as pl
from jax.experimental.pallas import tpu as pltpu

_LANE = 128
_SUB = 8
_MAX_TILE_ROWS = 8192          # hard cap; compute is chunked so VMEM stays bounded
_CHUNK_ROWS = 512              # in-kernel compute sub-slice (bounds live f32 temps)


def _cdiv(a, b):
    return -(-a // b)


def _round_up(a, m):
    return _cdiv(a, m) * m


@functools.lru_cache(maxsize=None)
def _num_tensorcores():
    """Best-effort TensorCores-per-chip (2 on megacore/v7x parts, else 1)."""
    try:
        info = pltpu.get_tpu_info()
        for name in ("num_cores", "tensorcore_count", "num_tensorcores",
                     "cores_per_chip", "core_count"):
            v = getattr(info, name, None)
            if v is not None:
                v = int(v)
                if v > 0:
                    return min(v, 2)
    except Exception:
        pass
    try:
        v = getattr(jax.devices()[0], "num_cores", None)
        if v:
            return min(int(v), 2)
    except Exception:
        pass
    return 1


def _targets_are_binary(target):
    """True iff target is concretely known to contain only {0, 1}."""
    try:
        return bool(jnp.all((target == 0) | (target == 1)))
    except Exception:  # traced under jit -> cannot decide, use the exact path
        return False


def _int_pow(p, g):
    """p ** g for static integer g >= 1 via exponentiation by squaring."""
    result = None
    base = p
    while g > 0:
        if g & 1:
            result = base if result is None else result * base
        g >>= 1
        if g:
            base = base * base
    return result


def _stable_sigmoid_from_exp(e, z_is_neg, newton_steps):
    """sigmoid(z) given e = exp(-|z|) and the sign of z (stable both tails)."""
    d = 1.0 + e
    inv = pl.reciprocal(d, approx=True)            # EUP vrcp, nearly free slot
    for _ in range(newton_steps):
        inv = inv * (2.0 - d * inv)                # Newton -> ~f32 accuracy
    return jnp.where(z_is_neg, e * inv, inv)


def _focal_elementwise(x, t, *, gamma, int_gamma, binary_t):
    """Per-element focal loss (f32 in / f32 out). Matches the PyTorch module."""
    ax = jnp.abs(x)
    e = jnp.exp(-ax)                               # exp(-|x|)     (EUP)
    lg = jnp.log1p(e)                              # log1p(exp(-|x|)) (EUP)
    xt = x * t
    # BCE with logits, numerically stable: x - x*t + max(-x,0) + log1p(exp(-|x|))
    loss = x - xt + jnp.maximum(-x, 0.0) + lg

    g_int = int(round(gamma)) if int_gamma else None
    if int_gamma and g_int == 0:
        return loss
    newton = 2 if (int_gamma and g_int >= 4) else 1

    if binary_t:
        # Hard {0,1} targets: z = -x*(2t-1) = +-x exactly, so |z| == |x| and the
        # transcendentals above are reused for the modulating factor.
        z_neg = (2.0 * xt - x) > 0.0               # z < 0  <=>  x*(2t-1) > 0
        if int_gamma:
            p = _stable_sigmoid_from_exp(e, z_neg, newton)     # sigmoid(z)
            factor = _int_pow(p, g_int)                        # sigmoid(z)**gamma
        else:
            # logsigmoid(z) = min(z,0) - log1p(exp(-|z|))
            invprobs = jnp.where(z_neg, -ax, 0.0) - lg
            factor = jnp.exp(invprobs * jnp.float32(gamma))
    else:
        # Soft targets: |z| != |x| in general -> exact general path.
        z = x - 2.0 * xt                           # -x*(2t-1)
        ez = jnp.exp(-jnp.abs(z))
        if int_gamma:
            p = _stable_sigmoid_from_exp(ez, z < 0.0, newton)
            factor = _int_pow(p, g_int)
        else:
            invprobs = jnp.minimum(z, 0.0) - jnp.log1p(ez)
            factor = jnp.exp(invprobs * jnp.float32(gamma))
    return factor * loss


def _focal_loss_kernel(x_ref, t_ref, o_ref, *, gamma, int_gamma, binary_t,
                       total, tr, chunk, steps, needs_mask):
    i = pl.program_id(1)

    @pl.when(i == 0)
    def _():
        o_ref[...] = jnp.zeros_like(o_ref)

    n_chunks = tr // chunk

    def chunk_loss(c):
        x = x_ref[c * chunk:(c + 1) * chunk, :].astype(jnp.float32)
        t = t_ref[c * chunk:(c + 1) * chunk, :].astype(jnp.float32)
        return _focal_elementwise(x, t, gamma=gamma, int_gamma=int_gamma,
                                  binary_t=binary_t)

    def accum(loss):
        # Pure-VPU partial reduction into the VMEM-resident (8,128) slab.
        partial = loss.reshape(-1, _SUB, _LANE).sum(axis=0)
        o_ref[...] += partial.reshape(o_ref.shape)

    if not needs_mask:
        for c in range(n_chunks):
            accum(chunk_loss(c))
    else:
        # Mask is only paid by the tail / fully-padded block(s); the hot path
        # above stays mask-free.  int32 offsets -> inputs limited to < 2**31
        # elements.
        blk = pl.program_id(0) * steps + i          # global block index
        block_base = blk * (tr * _LANE)
        is_tail = block_base + tr * _LANE > total

        @pl.when(jnp.logical_not(is_tail))
        def _():
            for c in range(n_chunks):
                accum(chunk_loss(c))

        @pl.when(is_tail)
        def _():
            rem = total - block_base                # may be <= 0 (fully padded)
            for c in range(n_chunks):
                loss = chunk_loss(c)
                row = jax.lax.broadcasted_iota(jnp.int32, loss.shape, 0)
                lane = jax.lax.broadcasted_iota(jnp.int32, loss.shape, 1)
                local = (c * chunk + row) * _LANE + lane
                accum(jnp.where(local < rem, loss, 0.0))


def focal_loss(input_, target, gamma, *, tile_rows=2048, binary_targets=None,
               num_partials=None, core_parallel=False):
    if input_.shape != target.shape:
        raise ValueError(
            "Target size ({}) must be the same as input size ({})".format(
                target.shape, input_.shape))

    total = int(input_.size)
    if total == 0:
        return jnp.float32(float("nan"))           # mean of empty, like torch

    if binary_targets is None:
        binary_targets = _targets_are_binary(target)
    binary_targets = bool(binary_targets)

    np_ = num_partials if num_partials is not None else _num_tensorcores()
    np_ = max(1, min(int(np_), 2))

    rows = _cdiv(total, _LANE)
    per_core = _round_up(_cdiv(rows, np_), _SUB)
    tr = max(_SUB, min(int(tile_rows), per_core, _MAX_TILE_ROWS))
    tr = _round_up(tr, _SUB)
    chunk = min(_CHUNK_ROWS, tr)
    if tr % chunk:
        tr = _round_up(tr, chunk)
    steps = _cdiv(per_core, tr)
    rows_padded = np_ * steps * tr
    padded_total = rows_padded * _LANE
    pad = padded_total - total

    xf = jnp.ravel(input_)
    tf = jnp.ravel(target)
    if binary_targets:
        # {0,1} targets are exact in bf16 -> halve target HBM traffic.
        tf = tf.astype(jnp.bfloat16)
    if pad:
        xf = jnp.pad(xf, (0, pad))
        tf = jnp.pad(tf, (0, pad))
    x2 = xf.reshape(rows_padded, _LANE)
    t2 = tf.reshape(rows_padded, _LANE)

    g = float(gamma)
    int_gamma = g.is_integer() and 0.0 <= g <= 8.0

    kernel = functools.partial(
        _focal_loss_kernel, gamma=g, int_gamma=int_gamma,
        binary_t=binary_targets, total=total, tr=tr, chunk=chunk, steps=steps,
        needs_mask=(pad != 0))

    if binary_targets:
        trans = 3
    elif int_gamma:
        trans = 4
    else:
        trans = 5
    in_bytes = (x2.size * x2.dtype.itemsize + t2.size * t2.dtype.itemsize)
    out_bytes = np_ * _SUB * _LANE * 4
    cost = pl.CostEstimate(flops=16 * padded_total,
                           transcendentals=trans * padded_total,
                           bytes_accessed=in_bytes + out_bytes)

    # Bump the scoped-VMEM budget only when the double-buffered tile I/O
    # would not fit the conservative defaults (v5e: 16 MiB).
    step_io_bytes = 2 * tr * _LANE * (x2.dtype.itemsize + t2.dtype.itemsize)
    vmem_limit = None
    if step_io_bytes > (12 << 20):
        vmem_limit = min(step_io_bytes + (8 << 20), 100 << 20)

    # TODO(synk): on v7x verify the size-2 leading axis actually shards across
    # both TensorCores; pass core_parallel=True there to force CORE_PARALLEL.
    sem0 = pltpu.CORE_PARALLEL if (core_parallel and np_ > 1) else "parallel"

    partials = pl.pallas_call(
        kernel,
        out_shape=jax.ShapeDtypeStruct((np_, _SUB, _LANE), jnp.float32),
        grid_spec=pltpu.PrefetchScalarGridSpec(
            num_scalar_prefetch=0,
            grid=(np_, steps),
            in_specs=[
                pl.BlockSpec((tr, _LANE), lambda c, i: (c * steps + i, 0)),
                pl.BlockSpec((tr, _LANE), lambda c, i: (c * steps + i, 0)),
            ],
            out_specs=pl.BlockSpec((1, _SUB, _LANE), lambda c, i: (c, 0, 0)),
        ),
        compiler_params=pltpu.CompilerParams(
            dimension_semantics=(sem0, "arbitrary"),
            vmem_limit_bytes=vmem_limit),
        cost_estimate=cost,
    )(x2, t2)

    # Tiny epilogue: combine the per-core (8,128) partial slabs, take the mean.
    return jnp.sum(partials) / jnp.float32(total)


def _focal_loss_ref(x, t, gamma):
    x = x.astype(jnp.float32)
    t = t.astype(jnp.float32)
    max_val = jnp.maximum(-x, 0.0)
    loss = x - x * t + max_val + jnp.log(jnp.exp(-max_val) + jnp.exp(-x - max_val))
    z = -x * (t * 2.0 - 1.0)
    invprobs = jnp.minimum(z, 0.0) - jnp.log1p(jnp.exp(-jnp.abs(z)))
    return jnp.mean(jnp.exp(invprobs * gamma) * loss)


if __name__ == "__main__":
    key = jax.random.PRNGKey(0)
    kx, kt, kx2, kt2, kx3, kt3 = jax.random.split(key, 6)

    # 1) NCHW logits / hard binary targets, integer gamma (shared-exp fast path).
    gamma = 2.0
    x = jax.random.normal(kx, (2, 4, 16, 16), dtype=jnp.float32)
    t = (jax.random.uniform(kt, (2, 4, 16, 16)) > 0.5).astype(jnp.float32)
    out = jax.block_until_ready(focal_loss(x, t, gamma))
    ref = _focal_loss_ref(x, t, gamma)
    assert jnp.allclose(out, ref, rtol=1e-5, atol=1e-5), (out, ref)

    # 2) Ragged shape (padding + tail-mask path), non-integer gamma, binary t.
    gamma2 = 2.5
    x2 = jax.random.normal(kx2, (2, 3, 5, 7), dtype=jnp.float32)
    t2 = (jax.random.uniform(kt2, (2, 3, 5, 7)) > 0.5).astype(jnp.float32)
    out2 = jax.block_until_ready(focal_loss(x2, t2, gamma2))
    ref2 = _focal_loss_ref(x2, t2, gamma2)
    assert jnp.allclose(out2, ref2, rtol=1e-5, atol=1e-5), (out2, ref2)

    # 3) Soft (non-binary) targets -> exact general path, integer gamma.
    x3 = jax.random.normal(kx3, (2, 4, 16, 16), dtype=jnp.float32)
    t3 = jax.random.uniform(kt3, (2, 4, 16, 16), dtype=jnp.float32)
    out3 = jax.block_until_ready(focal_loss(x3, t3, 2.0))
    ref3 = _focal_loss_ref(x3, t3, 2.0)
    assert jnp.allclose(out3, ref3, rtol=1e-5, atol=1e-5), (out3, ref3)

    print("KERNEL_OK")
</pallas_src>

<mosaic_0001>
module attributes {stable_mosaic.version = 11 : i64} {
  func.func @_focal_loss_kernel(%arg0: i32, %arg1: i32, %arg2: memref<16x128xf32, #tpu.memory_space<vmem>>, %arg3: memref<16x128xbf16, #tpu.memory_space<vmem>>, %arg4: memref<1x8x128xf32, #tpu.memory_space<vmem>>) attributes {dimension_semantics = [#tpu.dimension_semantics<parallel>, #tpu.dimension_semantics<arbitrary>], iteration_bounds = array<i64: 1, 1>, scalar_prefetch = 0 : i64, scratch_operands = 0 : i64, tpu.core_type = #tpu.core_type<tc>, window_params = [{transform_indices = @transform_0, window_bounds = array<i64: 16, 128>}, {transform_indices = @transform_1, window_bounds = array<i64: 16, 128>}, {transform_indices = @transform_2, window_bounds = array<i64: 1, 8, 128>}]} {
    %c0_i32 = arith.constant 0 : i32
    %0 = arith.cmpi eq, %arg1, %c0_i32 : i32
    %1 = arith.extui %0 : i1 to i32
    %c0_i32_0 = arith.constant 0 : i32
    %2 = arith.cmpi ne, %1, %c0_i32_0 : i32
    scf.if %2 {
      %cst_17 = arith.constant 0.000000e+00 : f32
      %41 = vector.broadcast %cst_17 : f32 to vector<1x8x128xf32>
      %c0_18 = arith.constant 0 : index
      %c0_19 = arith.constant 0 : index
      %c0_20 = arith.constant 0 : index
      %42 = vector.load %arg4[%c0_18, %c0_19, %c0_20] : memref<1x8x128xf32, #tpu.memory_space<vmem>>, vector<1x8x128xf32>
      tpu.vector_store %arg4[%c0_18, %c0_19, %c0_20], %41 {strides = array<i32>} : memref<1x8x128xf32, #tpu.memory_space<vmem>>, vector<1x8x128xf32>,
    } else {
    }
    %c0 = arith.constant 0 : index
    %c0_1 = arith.constant 0 : index
    %3 = vector.load %arg2[%c0, %c0_1] : memref<16x128xf32, #tpu.memory_space<vmem>>, vector<16x128xf32>
    %c0_2 = arith.constant 0 : index
    %c0_3 = arith.constant 0 : index
    %4 = vector.load %arg3[%c0_2, %c0_3] : memref<16x128xbf16, #tpu.memory_space<vmem>>, vector<16x128xbf16>
    %5 = arith.extf %4 : vector<16x128xbf16> to vector<16x128xf32>
    %6 = math.absf %3 : vector<16x128xf32>
    %cst = arith.constant 0.000000e+00 : f32
    %7 = vector.broadcast %cst : f32 to vector<16x128xf32>
    %8 = arith.subf %7, %6 : vector<16x128xf32>
    %9 = math.exp %8 : vector<16x128xf32>
    %10 = math.log1p %9 : vector<16x128xf32>
    %11 = arith.mulf %3, %5 : vector<16x128xf32>
    %12 = arith.subf %3, %11 : vector<16x128xf32>
    %cst_4 = arith.constant 0.000000e+00 : f32
    %13 = vector.broadcast %cst_4 : f32 to vector<16x128xf32>
    %14 = arith.subf %13, %3 : vector<16x128xf32>
    %cst_5 = arith.constant 0.000000e+00 : f32
    %15 = vector.broadcast %cst_5 : f32 to vector<16x128xf32>
    %16 = arith.maximumf %14, %15 : vector<16x128xf32>
    %17 = arith.addf %12, %16 : vector<16x128xf32>
    %18 = arith.addf %17, %10 : vector<16x128xf32>
    %cst_6 = arith.constant 2.000000e+00 : f32
    %19 = vector.broadcast %cst_6 : f32 to vector<16x128xf32>
    %20 = arith.mulf %19, %11 : vector<16x128xf32>
    %21 = arith.subf %20, %3 : vector<16x128xf32>
    %cst_7 = arith.constant 0.000000e+00 : f32
    %22 = vector.broadcast %cst_7 : f32 to vector<16x128xf32>
    %23 = arith.cmpf ogt, %21, %22 : vector<16x128xf32>
    %cst_8 = arith.constant 1.000000e+00 : f32
    %24 = vector.broadcast %cst_8 : f32 to vector<16x128xf32>
    %25 = arith.addf %24, %9 : vector<16x128xf32>
    %26 = tpu.reciprocal %25 {approx = true} : vector<16x128xf32> -> vector<16x128xf32>
    %27 = arith.mulf %25, %26 : vector<16x128xf32>
    %cst_9 = arith.constant 2.000000e+00 : f32
    %28 = vector.broadcast %cst_9 : f32 to vector<16x128xf32>
    %29 = arith.subf %28, %27 : vector<16x128xf32>
    %30 = arith.mulf %26, %29 : vector<16x128xf32>
    %31 = arith.mulf %9, %30 : vector<16x128xf32>
    %32 = arith.select %23, %31, %30 : vector<16x128xi1>, vector<16x128xf32>
    %33 = arith.mulf %32, %32 : vector<16x128xf32>
    %34 = arith.mulf %33, %18 : vector<16x128xf32>
    %35 = vector.shape_cast %34 : vector<16x128xf32> to vector<2x8x128xf32>
    %cst_10 = arith.constant dense<0.000000e+00> : vector<8x128xf32>
    %36 = vector.multi_reduction <add>, %35, %cst_10 [0] : vector<2x8x128xf32> to vector<8x128xf32>
    %c0_11 = arith.constant 0 : index
    %c0_12 = arith.constant 0 : index
    %c0_13 = arith.constant 0 : index
    %37 = vector.load %arg4[%c0_11, %c0_12, %c0_13] : memref<1x8x128xf32, #tpu.memory_space<vmem>>, vector<1x8x128xf32>
    %38 = vector.shape_cast %36 : vector<8x128xf32> to vector<1x8x128xf32>
    %39 = arith.addf %37, %38 : vector<1x8x128xf32>
    %c0_14 = arith.constant 0 : index
    %c0_15 = arith.constant 0 : index
    %c0_16 = arith.constant 0 : index
    %40 = vector.load %arg4[%c0_14, %c0_15, %c0_16] : memref<1x8x128xf32, #tpu.memory_space<vmem>>, vector<1x8x128xf32>
    tpu.vector_store %arg4[%c0_14, %c0_15, %c0_16], %39 {strides = array<i32>} : memref<1x8x128xf32, #tpu.memory_space<vmem>>, vector<1x8x128xf32>,
    return
  }
  func.func @transform_0(%arg0: i32, %arg1: i32) -> (i32, i32) {
    %c1_i32 = arith.constant 1 : i32
    %0 = arith.muli %arg0, %c1_i32 : i32
    %1 = arith.addi %0, %arg1 : i32
    %c0_i32 = arith.constant 0 : i32
    %c0_i32_0 = arith.constant 0 : i32
    return %1, %c0_i32 : i32, i32
  }
  func.func @transform_1(%arg0: i32, %arg1: i32) -> (i32, i32) {
    %c1_i32 = arith.constant 1 : i32
    %0 = arith.muli %arg0, %c1_i32 : i32
    %1 = arith.addi %0, %arg1 : i32
    %c0_i32 = arith.constant 0 : i32
    %c0_i32_0 = arith.constant 0 : i32
    return %1, %c0_i32 : i32, i32
  }
  func.func @transform_2(%arg0: i32, %arg1: i32) -> (i32, i32, i32) {
    %c0_i32 = arith.constant 0 : i32
    %c0_i32_0 = arith.constant 0 : i32
    %c0_i32_1 = arith.constant 0 : i32
    return %arg0, %c0_i32, %c0_i32_0 : i32, i32, i32
  }
}

</mosaic_0001>

<bundles_post_ra>
// kernel: tpu_custom_call.1
= control target key start
LH: loop header
LB: loop body
LE: loop exit
PB: predicated region body
PF: predicated region fallthrough
CT: control target
= control target key end

     0   :  { %7 = vsyncpa [#allocation3], 0  ;;  %s305_s0 = inlined_call_operand.hbm [shape: f32[16,128], index: 0, kind: input, shape index: {}]   ;;  %s306_s1 = inlined_call_operand.hbm [shape: bf16[16,128], index: 1, kind: input, shape index: {}]   ;;  %s307_s2 = inlined_call_operand.hbm [shape: f32[1,8,128], index: 2, kind: output, shape index: {}]  }
   0x1   :  { %8 = vsyncpa [#allocation6], 0 }
   0x2   :  { %9 = vsyncpa [#allocation4], 0  ;;  %s241_s9 = smov [#allocation2]   ;;  %s169_s13 = scalar_lea.hbm %s305_s0, 256 }
   0x3   :  { %s19_s10 = sshll.u32 %s241_s9, 4  ;;  %p170_p0 = scmp.ne.s32.totalorder %s305_s0, %s169_s13  ;;  %s20_s10 = int_to_ptr.vmem [resolvable:$true] %s19_s10 }
   0x4   :  { %p173_p1 = scmp.lt.u32.totalorder %s169_s13, %s305_s0 }
   0x6   :  { %p175_p2 = pnand %p173_p1, %p170_p0 }
   0x8   :  { %178 = shalt.err (!%p175_p2)
}
   0x9   :  { %s179_s18 = scalar_lea.vmem %s20_s10, 256  ;;  %p184_p4 = scmp.lt.s32.totalorder %s20_s10, %s20_s10 }
   0xa   :  { %p180_p3 = scmp.ne.s32.totalorder %s20_s10, %s179_s18  ;;  %p185_p5 = scmp.lt.s32.totalorder %s179_s18, %s179_s18 }
   0xc   :  { %p186_p6 = por %p185_p5, %p184_p4 }
   0xe   :  { %p187_p7 = pnand %p186_p6, %p180_p3 }
  0x10   :  { %190 = shalt.err (!%p187_p7)
}
  0x11   :  { %s242_s19 = smov 128   ;;  %s243_s20 = smov 8  }
  0x12   :  { %25 = dma.hbm_to_vmem [thread:$0]  %s305_s0, 256, %s20_s10, [#allocation3], %s242_s19, %s242_s19, %s243_s20  }
  0x13   :  { %s244_s23 = smov [#allocation5]   ;;  %s191_s27 = scalar_lea.hbm %s306_s1, 128 }
  0x14   :  { %s35_s24 = sshll.u32 %s244_s23, 4  ;;  %p192_p8 = scmp.ne.s32.totalorder %s306_s1, %s191_s27  ;;  %s36_s24 = int_to_ptr.vmem [resolvable:$true] %s35_s24 }
  0x15   :  { %p195_p9 = scmp.lt.u32.totalorder %s191_s27, %s306_s1 }
  0x17   :  { %p197_p10 = pnand %p195_p9, %p192_p8 }
  0x19   :  { %200 = shalt.err (!%p197_p10)
}
  0x1a   :  { %s201_s4 = scalar_lea.vmem %s36_s24, 128  ;;  %p206_p12 = scmp.lt.s32.totalorder %s36_s24, %s36_s24 }
  0x1b   :  { %p202_p11 = scmp.ne.s32.totalorder %s36_s24, %s201_s4  ;;  %p207_p13 = scmp.lt.s32.totalorder %s201_s4, %s201_s4 }
  0x1d   :  { %p208_p0 = por %p207_p13, %p206_p12 }
  0x1f   :  { %p209_p1 = pnand %p208_p0, %p202_p11 }
  0x21   :  { %212 = shalt.err (!%p209_p1)
}
  0x22   :  { %s245_s0 = smov 64   ;;  %s246_s5 = smov 4  }
  0x23   :  { %41 = dma.hbm_to_vmem [thread:$0]  %s306_s1, 128, %s36_s24, [#allocation6], %s245_s0, %s245_s0, %s246_s5  }
  0x24   :  { %235 = dma.done.wait [#allocation3], 256  }
  0x25   :  { %236 = vsyncadd [#allocation3], 4294967040 }
  0x26   :  { %237 = dma.done.wait [#allocation6], 128  }
  0x27   :  { %238 = vsyncadd [#allocation6], 4294967168  ;;  %v57_v0 = vld [vmem:[#allocation2] sm:$0xff]  ;;  %v58_v1 = vld [vmem:[#allocation2 + $0x8] sm:$0xff]  ;;  %s247_s1 = smov [#allocation7]  }
  0x28   :  { %v63_v2 = vand.u32 2147483647, %v57_v0  ;;  %v64_v3 = vand.u32 2147483647, %v58_v1  ;;  %v146_v10 = vld [vmem:[#allocation5] sm:$0xff]   ;;  %v93_v19 = vsub.f32 0.0, %v57_v0 }
  0x29   :  { %v147_v13 = vunpack.c.l.bf16 %v146_v10  ;;  %v148_v14 = vunpack.c.h.bf16 %v146_v10  ;;  %v94_v20 = vsub.f32 0.0, %v58_v1  ;;  %s135_s8 = sshll.u32 %s247_s1, 4  ;;  %s136_s8 = int_to_ptr.vmem [resolvable:$true] %s135_s8 }
  0x2a   :  { %v65_v4 = vsub.f32 0.0, %v63_v2  ;;  %v66_v5 = vsub.f32 0.0, %v64_v3  ;;  %v95_v32 = vmax.f32 %v93_v19, 0.0  ;;  %s213_s9 = scalar_lea.vmem %s136_s8, 128  ;;  %p218_p3 = scmp.lt.s32.totalorder %s136_s8, %s136_s8 }
  0x2b   :  { %v89_v16 = vmul.f32 %v147_v13, %v57_v0  ;;  %v90_v18 = vmul.f32 %v148_v14, %v58_v1  ;;  %v96_v33 = vmax.f32 %v94_v20, 0.0  ;;  %p214_p2 = scmp.ne.s32.totalorder %s136_s8, %s213_s9  ;;  %p219_p4 = scmp.lt.s32.totalorder %s213_s9, %s213_s9 }
  0x2c   :  { %v67_v6 = vmul.f32 1.442695, %v65_v4  ;;  %v69_v7 = vmul.f32 1.442695, %v66_v5 }
  0x2d   :  { %v101_v22 = vmul.f32 2.0, %v89_v16  ;;  %v102_v28 = vmul.f32 2.0, %v90_v18  ;;  %v91_v30 = vsub.f32 %v57_v0, %v89_v16  ;;  %v92_v31 = vsub.f32 %v58_v1, %v90_v18  ;;  %p220_p5 = por %p219_p4, %p218_p3 }
  0x2e   :  { %157 = vpow2.f32 %v67_v6 }
  0x2f   :  { %159 = vpow2.f32 %v69_v7  ;;  %v103_v37 = vsub.f32 %v101_v22, %v57_v0  ;;  %v104_v43 = vsub.f32 %v102_v28, %v58_v1  ;;  %v97_v45 = vadd.f32 %v95_v32, %v91_v30  ;;  %p221_p6 = pnand %p220_p5, %p214_p2 }
  0x30   :  { %v98_v48 = vadd.f32 %v96_v33, %v92_v31 }
  0x31   :  { %vm105_vm2 = vcmp.gt.f32.partialorder %v103_v37, 0.0  ;;  %vm106_vm3 = vcmp.gt.f32.partialorder %v104_v43, 0.0 }
  0x38   :  { %v158_v8 = vpop.eup %157 }
  0x39   :  { %v160_v9 = vpop.eup %159  ;;  %v71_v11 = vadd.f32 1.0, %v158_v8  ;;  %v74_v15 = vmul.f32 -0.5, %v158_v8  ;;  %v77_v24 = vand.u32 2147483647, %v158_v8 }
  0x3a   :  { %v80_v12 = vadd.f32 1.0, %v160_v9  ;;  %v83_v17 = vmul.f32 -0.5, %v160_v9  ;;  %v86_v27 = vand.u32 2147483647, %v160_v9 }
  0x3b   :  { %161 = vlog2.f32 %v71_v11  ;;  %v75_v21 = vadd.f32 1.0, %v74_v15  ;;  %vm287_vm0 = vcmp.lt.f32.partialorder %v77_v24, 0.0004427343 }
  0x3c   :  { %163 = vlog2.f32 %v80_v12  ;;  %v84_v25 = vadd.f32 1.0, %v83_v17  ;;  %vm87_vm1 = vcmp.lt.f32.partialorder %v86_v27, 0.0004427343 }
  0x3d   :  { %165 = vrcp.f32 %v71_v11  ;;  %v76_v36 = vmul.f32 %v158_v8, %v75_v21 }
  0x3e   :  { %167 = vrcp.f32 %v80_v12  ;;  %v85_v41 = vmul.f32 %v160_v9, %v84_v25 }
  0x45   :  { %v162_v23 = vpop.eup %161 }
  0x46   :  { %v164_v26 = vpop.eup %163  ;;  %v73_v35 = vmul.f32 0.6931472, %v162_v23 }
  0x47   :  { %v166_v29 = vpop.eup %165  ;;  %v82_v40 = vmul.f32 0.6931472, %v164_v26 }
  0x48   :  { %v168_v34 = vpop.eup %167  ;;  %v111_v38 = vmul.f32 %v166_v29, %v71_v11  ;;  %v79_v47 = vsel %vm287_vm0, %v76_v36, %v73_v35 }
  0x49   :  { %v112_v42 = vmul.f32 %v168_v34, %v80_v12  ;;  %v88_v50 = vsel %vm87_vm1, %v85_v41, %v82_v40  ;;  %v99_v53 = vadd.f32 %v97_v45, %v79_v47 }
  0x4a   :  { %v113_v44 = vsub.f32 2.0, %v111_v38  ;;  %v100_v55 = vadd.f32 %v98_v48, %v88_v50 }
  0x4b   :  { %v114_v46 = vsub.f32 2.0, %v112_v42 }
  0x4c   :  { %v115_v49 = vmul.f32 %v166_v29, %v113_v44 }
  0x4d   :  { %v116_v51 = vmul.f32 %v168_v34, %v114_v46 }
  0x4e   :  { %v117_v52 = vmul.f32 %v158_v8, %v115_v49 }
  0x4f   :  { %v118_v54 = vmul.f32 %v160_v9, %v116_v51 }
  0x50   :  { %v119_v56 = vsel %vm105_vm2, %v117_v52, %v115_v49 }
  0x51   :  { %v120_v57 = vsel %vm106_vm3, %v118_v54, %v116_v51  ;;  %v121_v58 = vmul.f32 %v119_v56, %v119_v56 }
  0x52   :  { %v122_v59 = vmul.f32 %v120_v57, %v120_v57 }
  0x53   :  { %v123_v60 = vmul.f32 %v121_v58, %v99_v53 }
  0x54   :  { %v124_v61 = vmul.f32 %v122_v59, %v100_v55 }
  0x56   :  { %v125_v62 = vadd.f32 %v124_v61, %v123_v60 }
  0x58   :  { %128 = vst [vmem:[#allocation7] sm:$0xff] %v125_v62 }
  0x59   :  { %224 = shalt.err (!%p221_p6)
}
  0x5a   :  { %s225_s12 = scalar_lea.hbm %s307_s2, 128 }
  0x5b   :  { %p226_p7 = scmp.ne.s32.totalorder %s307_s2, %s225_s12  ;;  %p229_p8 = scmp.lt.u32.totalorder %s225_s12, %s307_s2 }
  0x5d   :  { %p231_p9 = pnand %p229_p8, %p226_p7 }
  0x5f   :  { %234 = shalt.err (!%p231_p9)
}
  0x60   :  { %138 = dma.vmem_to_hbm [thread:$0]  %s136_s8, 128, %s307_s2, [#allocation4]  }
  0x61   :  { %239 = dma.done.wait [#allocation4], 128  }
  0x62   :  { %240 = vsyncadd [#allocation4], 4294967168 }
  0x63   :  { %142 = vsyncpa [#allocation3], 1 }
  0x64   :  { %143 = vsyncpa [#allocation6], 1 }
  0x65   :  { %144 = vsyncpa [#allocation4], 1 }

</bundles_post_ra>
